<compile_context>
chip_gen: v7x
topology: tpu7x:2x2x1
jax: 0.10.0
libtpu: 0.0.40
codegen_flags: <defaults>
</compile_context>

<pallas_src>
import jax
import jax.numpy as jnp
from jax.experimental import pallas as pl
from jax.experimental.pallas import tpu as pltpu


def _disc_loss_kernel(weight_ref, fake_ref, real_ref, w_ref, b_ref, out_ref):
    # weight_ref : (1,)   f32 SMEM   d_motion_loss_weight
    # fake_ref   : (B, K) f32 VMEM   flattened preds['theta']   (K = T*85)
    # real_ref   : (B, K) f32 VMEM   flattened mocap['theta']
    # w_ref      : (K, O) f32 VMEM   discriminator weight, zero rows outside 6:75
    # b_ref      : (1, O) f32 VMEM   discriminator bias
    # out_ref    : (2,)   f32 SMEM   [e_motion_disc_loss, d_motion_disc_loss]
    fake = fake_ref[...]
    real = real_ref[...]
    w = w_ref[...]
    b = b_ref[...]

    B = fake.shape[0]
    O = w.shape[1]

    # One fused MXU matmul for both branches: (2B, K) @ (K, O).
    stacked = jnp.concatenate([fake, real], axis=0)
    disc = jnp.dot(stacked, w, preferred_element_type=jnp.float32) + b  # (2B, O)
    sq = disc * disc  # single squaring pass, reused by e_loss / la / lb

    s_f = jnp.sum(disc[:B])
    ss_f = jnp.sum(sq[:B])
    s_r = jnp.sum(disc[B:])
    ss_r = jnp.sum(sq[B:])

    n = jnp.float32(B * O)        # element count per branch
    inv_k = jnp.float32(1.0 / B)  # torch divides by disc_value.shape[0]
    weight = weight_ref[0]

    # enc_loss: sum((D(fake) - 1)^2) / k   (detach() only affects grads)
    e_loss = (ss_f - 2.0 * s_f + n) * inv_k * weight
    # dec_loss: la = sum((D(real)-1)^2)/ka, lb = sum(D(fake)^2)/kb, d = la + lb
    la = (ss_r - 2.0 * s_r + n) * inv_k
    lb = ss_f * inv_k
    d_loss = (la + lb) * weight

    out_ref[0] = e_loss
    out_ref[1] = d_loss


def _pad_disc_w(disc_w, T, d_theta=85, lo=6, hi=75):
    """Fold the theta[:, :, 6:75] slice into the weight by zero-padding rows."""
    O = disc_w.shape[1]
    w3 = jnp.zeros((T, d_theta, O), jnp.float32)
    w3 = w3.at[:, lo:hi, :].set(disc_w.reshape(T, hi - lo, O).astype(jnp.float32))
    return w3.reshape(T * d_theta, O)


def disc_loss(preds_theta, mocap_theta, disc_w, disc_b, d_motion_loss_weight):
    """Returns (e_motion_disc_loss, d_motion_disc_loss) as f32 scalars."""
    B, T, d_theta = preds_theta.shape
    K = T * d_theta
    O = disc_w.shape[1]

    def as_f32(x):
        return x if x.dtype == jnp.float32 else x.astype(jnp.float32)

    # Free row-major reshapes; no slice/copy of the activations before the kernel.
    fake_flat = as_f32(preds_theta).reshape(B, K)
    real_flat = as_f32(mocap_theta).reshape(B, K)
    w_pad = _pad_disc_w(disc_w, T, d_theta)          # (K, O), tiny
    b_row = as_f32(disc_b).reshape(1, O)
    weight = jnp.asarray([d_motion_loss_weight], dtype=jnp.float32)

    vmem = pl.BlockSpec(memory_space=pltpu.MemorySpace.VMEM)
    smem = pl.BlockSpec(memory_space=pltpu.MemorySpace.SMEM)

    cost = pl.CostEstimate(
        flops=2 * (2 * B) * K * O + 8 * B * O,
        transcendentals=0,
        bytes_accessed=4 * (2 * B * K + K * O + O + 1 + 2),
    )

    out = pl.pallas_call(
        _disc_loss_kernel,
        out_shape=jax.ShapeDtypeStruct((2,), jnp.float32),
        in_specs=[smem, vmem, vmem, vmem, vmem],
        out_specs=smem,
        cost_estimate=cost,
    )(weight, fake_flat, real_flat, w_pad, b_row)
    return out[0], out[1]


def _reference(preds_theta, mocap_theta, disc_w, disc_b, weight):
    B, T, _ = preds_theta.shape
    fake = preds_theta[:, :, 6:75].reshape(B, T * 69).astype(jnp.float32)
    real = mocap_theta[:, :, 6:75].reshape(B, T * 69).astype(jnp.float32)
    fd = fake @ disc_w + disc_b[None, :]
    rd = real @ disc_w + disc_b[None, :]
    e = jnp.sum((fd - 1.0) ** 2) / B * weight
    d = (jnp.sum((rd - 1.0) ** 2) / B + jnp.sum(fd ** 2) / B) * weight
    return e, d


if __name__ == "__main__":
    B, T, D_THETA, D_OUT = 2, 8, 85, 2
    WEIGHT = 0.5

    key = jax.random.PRNGKey(0)
    k1, k2, k3, k4 = jax.random.split(key, 4)

    preds_theta = jax.random.normal(k1, (B, T, D_THETA), dtype=jnp.float32)
    mocap_theta = jax.random.normal(k2, (B, T, D_THETA), dtype=jnp.float32)
    # Deterministic synthetic discriminator parameters (linear stand-in).
    disc_w = 0.05 * jax.random.normal(k3, (T * 69, D_OUT), dtype=jnp.float32)
    disc_b = 0.05 * jax.random.normal(k4, (D_OUT,), dtype=jnp.float32)

    e_loss, d_loss = disc_loss(preds_theta, mocap_theta, disc_w, disc_b, WEIGHT)
    jax.block_until_ready((e_loss, d_loss))

    e_ref, d_ref = _reference(preds_theta, mocap_theta, disc_w, disc_b, WEIGHT)
    assert jnp.allclose(e_loss, e_ref, rtol=1e-5, atol=1e-5), (e_loss, e_ref)
    assert jnp.allclose(d_loss, d_ref, rtol=1e-5, atol=1e-5), (d_loss, d_ref)

    print("KERNEL_OK")
</pallas_src>

<mosaic_0001>
module attributes {stable_mosaic.version = 11 : i64} {
  func.func @_disc_loss_kernel(%arg0: memref<1xf32, #tpu.memory_space<smem>>, %arg1: memref<2x680xf32, #tpu.memory_space<vmem>>, %arg2: memref<2x680xf32, #tpu.memory_space<vmem>>, %arg3: memref<680x2xf32, #tpu.memory_space<vmem>>, %arg4: memref<1x2xf32, #tpu.memory_space<vmem>>, %arg5: memref<2xf32, #tpu.memory_space<smem>>) attributes {dimension_semantics = [], scalar_prefetch = 0 : i64, scratch_operands = 0 : i64, tpu.core_type = #tpu.core_type<tc>} {
    %c0 = arith.constant 0 : index
    %c0_0 = arith.constant 0 : index
    %0 = vector.load %arg1[%c0, %c0_0] : memref<2x680xf32, #tpu.memory_space<vmem>>, vector<2x680xf32>
    %c0_1 = arith.constant 0 : index
    %c0_2 = arith.constant 0 : index
    %1 = vector.load %arg2[%c0_1, %c0_2] : memref<2x680xf32, #tpu.memory_space<vmem>>, vector<2x680xf32>
    %c0_3 = arith.constant 0 : index
    %c0_4 = arith.constant 0 : index
    %2 = vector.load %arg3[%c0_3, %c0_4] : memref<680x2xf32, #tpu.memory_space<vmem>>, vector<680x2xf32>
    %c0_5 = arith.constant 0 : index
    %c0_6 = arith.constant 0 : index
    %3 = vector.load %arg4[%c0_5, %c0_6] : memref<1x2xf32, #tpu.memory_space<vmem>>, vector<1x2xf32>
    %4 = tpu.concatenate %0, %1 in 0 : vector<2x680xf32>, vector<2x680xf32> -> vector<4x680xf32>
    %cst = arith.constant dense<0.000000e+00> : vector<4x2xf32>
    %5 = tpu.matmul %4, %2, %cst {dimension_numbers = #tpu.dot_dimension_numbers<[1], [0], [0], [1], [0, 0, 1, 1], [], []>} : vector<4x680xf32>, vector<680x2xf32>, vector<4x2xf32> -> vector<4x2xf32>
    %6 = vector.broadcast %3 : vector<1x2xf32> to vector<4x2xf32>
    %7 = arith.addf %5, %6 : vector<4x2xf32>
    %8 = arith.mulf %7, %7 : vector<4x2xf32>
    %9 = vector.extract_strided_slice %7 {offsets = [0, 0], sizes = [2, 2], strides = [1, 1]} : vector<4x2xf32> to vector<2x2xf32>
    %10 = vector.shape_cast %9 : vector<2x2xf32> to vector<1x2x2xf32>
    %cst_7 = arith.constant dense<0.000000e+00> : vector<1xf32>
    %11 = vector.multi_reduction <add>, %10, %cst_7 [1, 2] : vector<1x2x2xf32> to vector<1xf32>
    %12 = vector.shape_cast %11 : vector<1xf32> to vector<1x1x1xf32>
    %13 = vector.extract %12[0, 0, 0] : f32 from vector<1x1x1xf32>
    %14 = vector.extract_strided_slice %8 {offsets = [0, 0], sizes = [2, 2], strides = [1, 1]} : vector<4x2xf32> to vector<2x2xf32>
    %15 = vector.shape_cast %14 : vector<2x2xf32> to vector<1x2x2xf32>
    %cst_8 = arith.constant dense<0.000000e+00> : vector<1xf32>
    %16 = vector.multi_reduction <add>, %15, %cst_8 [1, 2] : vector<1x2x2xf32> to vector<1xf32>
    %17 = vector.shape_cast %16 : vector<1xf32> to vector<1x1x1xf32>
    %18 = vector.extract %17[0, 0, 0] : f32 from vector<1x1x1xf32>
    %19 = vector.extract_strided_slice %7 {offsets = [2, 0], sizes = [2, 2], strides = [1, 1]} : vector<4x2xf32> to vector<2x2xf32>
    %20 = vector.shape_cast %19 : vector<2x2xf32> to vector<1x2x2xf32>
    %cst_9 = arith.constant dense<0.000000e+00> : vector<1xf32>
    %21 = vector.multi_reduction <add>, %20, %cst_9 [1, 2] : vector<1x2x2xf32> to vector<1xf32>
    %22 = vector.shape_cast %21 : vector<1xf32> to vector<1x1x1xf32>
    %23 = vector.extract %22[0, 0, 0] : f32 from vector<1x1x1xf32>
    %24 = vector.extract_strided_slice %8 {offsets = [2, 0], sizes = [2, 2], strides = [1, 1]} : vector<4x2xf32> to vector<2x2xf32>
    %25 = vector.shape_cast %24 : vector<2x2xf32> to vector<1x2x2xf32>
    %cst_10 = arith.constant dense<0.000000e+00> : vector<1xf32>
    %26 = vector.multi_reduction <add>, %25, %cst_10 [1, 2] : vector<1x2x2xf32> to vector<1xf32>
    %27 = vector.shape_cast %26 : vector<1xf32> to vector<1x1x1xf32>
    %28 = vector.extract %27[0, 0, 0] : f32 from vector<1x1x1xf32>
    %c0_11 = arith.constant 0 : index
    %29 = memref.load %arg0[%c0_11] : memref<1xf32, #tpu.memory_space<smem>>
    %cst_12 = arith.constant 2.000000e+00 : f32
    %30 = arith.mulf %cst_12, %13 : f32
    %31 = arith.subf %18, %30 : f32
    %cst_13 = arith.constant 4.000000e+00 : f32
    %32 = arith.addf %31, %cst_13 : f32
    %cst_14 = arith.constant 5.000000e-01 : f32
    %33 = arith.mulf %32, %cst_14 : f32
    %34 = arith.mulf %33, %29 : f32
    %cst_15 = arith.constant 2.000000e+00 : f32
    %35 = arith.mulf %cst_15, %23 : f32
    %36 = arith.subf %28, %35 : f32
    %cst_16 = arith.constant 4.000000e+00 : f32
    %37 = arith.addf %36, %cst_16 : f32
    %cst_17 = arith.constant 5.000000e-01 : f32
    %38 = arith.mulf %37, %cst_17 : f32
    %cst_18 = arith.constant 5.000000e-01 : f32
    %39 = arith.mulf %18, %cst_18 : f32
    %40 = arith.addf %38, %39 : f32
    %41 = arith.mulf %40, %29 : f32
    %c0_19 = arith.constant 0 : index
    %42 = memref.load %arg5[%c0_19] : memref<2xf32, #tpu.memory_space<smem>>
    memref.store %34, %arg5[%c0_19] : memref<2xf32, #tpu.memory_space<smem>>
    %c1 = arith.constant 1 : index
    %43 = memref.load %arg5[%c1] : memref<2xf32, #tpu.memory_space<smem>>
    memref.store %41, %arg5[%c1] : memref<2xf32, #tpu.memory_space<smem>>
    return
  }
}

</mosaic_0001>

<bundles_post_ra>
// kernel: tpu_custom_call.1
= control target key start
LH: loop header
LB: loop body
LE: loop exit
PB: predicated region body
PF: predicated region fallthrough
CT: control target
= control target key end

     0   :  { %v118_v3 = vlaneseq  ;;  %v678_v8 = vmov 0.0|0.0   ;;  %v679_v9 = vmov 1983009808   ;;  %vm179_vm0 = vcmask 1041408   ;;  %s1059_s0 = inlined_call_operand.<no memory space> [shape: f32[1], index: 0, kind: input, shape index: {}]   ;;  %s1060_s1 = inlined_call_operand.vmem [shape: f32[2,680], index: 1, kind: input, shape index: {}]   ;;  %s1061_s2 = inlined_call_operand.vmem [shape: f32[2,680], index: 2, kind: input, shape index: {}]   ;;  %s1062_s3 = inlined_call_operand.vmem [shape: f32[680,2], index: 3, kind: input, shape index: {}]   ;;  %s1063_s4 = inlined_call_operand.vmem [shape: f32[1,2], index: 4, kind: input, shape index: {}]   ;;  %s1064_s5 = inlined_call_operand.hbm [shape: f32[2], index: 5, kind: output, shape index: {}]  }
   0x1   :  { %v42_v0 = vld [vmem:[%s1062_s3 + $0x80] sm:$0xff]  ;;  %v43_v1 = vld [vmem:[%s1062_s3 + $0x88] sm:$0xff]  ;;  %v44_v6 = vld [vmem:[%s1062_s3 + $0x90] sm:$0xff]  ;;  %621 = vmatprep.subr.bf16.mxu0 %v678_v8  ;;  %v116_v10 = vunpack.c.l.s4 %v679_v9 }
   0x2   :  { %v26_v2 = vld [vmem:[%s1062_s3] sm:$0xff]  ;;  %v557_v4 = vpack.c.bf16 %v43_v1, %v42_v0  ;;  %v27_v5 = vld [vmem:[%s1062_s3 + $0x8] sm:$0xff]  ;;  %v45_v7 = vld [vmem:[%s1062_s3 + $0x98] sm:$0xff]  ;;  %v119_v19 = vshrl.u32 %v118_v3, 7 }
   0x3   :  { %v559_v11 = vpack.c.bf16 %v27_v5, %v26_v2  ;;  %v561_v12 = vpack.c.bf16 %v45_v7, %v44_v6  ;;  %v28_v13 = vld [vmem:[%s1062_s3 + $0x10] sm:$0xff]  ;;  %v29_v14 = vld [vmem:[%s1062_s3 + $0x18] sm:$0xff]  ;;  %v46_v15 = vld [vmem:[%s1062_s3 + $0xa0] sm:$0xff]  ;;  %v117_v18 = vunpack.c.0.s8 %v116_v10 }
   0x4   :  { %558 = vmatprep.subr.bf16.mxu1 %v557_v4  ;;  %v47_v16 = vld [vmem:[%s1062_s3 + $0xa8] sm:$0xff]  ;;  %v563_v17 = vpack.c.bf16 %v29_v14, %v28_v13  ;;  %v30_v21 = vld [vmem:[%s1062_s3 + $0x20] sm:$0xff]  ;;  %v48_v23 = vld [vmem:[%s1062_s3 + $0xb0] sm:$0xff] }
   0x5   :  { %560 = vmatpush3.bf16.msra.mxu1 %v559_v11  ;;  %v565_v20 = vpack.c.bf16 %v47_v16, %v46_v15  ;;  %v31_v22 = vld [vmem:[%s1062_s3 + $0x28] sm:$0xff]  ;;  %v49_v24 = vld [vmem:[%s1062_s3 + $0xb8] sm:$0xff]  ;;  %v32_v26 = vld [vmem:[%s1062_s3 + $0x30] sm:$0xff]  ;;  %v758_v27 = vsub.s32 %v117_v18, %v119_v19 }
   0x6   :  { %562 = vmatprep.subr.bf16.mxu1 %v561_v12  ;;  %v567_v25 = vpack.c.bf16 %v31_v22, %v30_v21  ;;  %v569_v28 = vpack.c.bf16 %v49_v24, %v48_v23  ;;  %v33_v29 = vld [vmem:[%s1062_s3 + $0x38] sm:$0xff]  ;;  %v90_v30 = vld [vmem:[%s1062_s3 + $0x200] sm:$0xff]  ;;  %v91_v31 = vld [vmem:[%s1062_s3 + $0x208] sm:$0xff] }
   0x7   :  { %v50_v32 = vld [vmem:[%s1062_s3 + $0xc0] sm:$0xff]  ;;  %v51_v33 = vld [vmem:[%s1062_s3 + $0xc8] sm:$0xff]  ;;  %v622_v34 = vpack.c.bf16 %v91_v31, %v90_v30  ;;  %v571_v37 = vpack.c.bf16 %v33_v29, %v32_v26  ;;  %v92_v39 = vld [vmem:[%s1062_s3 + $0x210] sm:$0xff] }
   0x8   :  { %v778_v35 = vld [vmem:[%s1060_s1] sm:$0xff]  ;;  %v93_v40 = vld [vmem:[%s1062_s3 + $0x218] sm:$0xff]  ;;  %v573_v41 = vpack.c.bf16 %v51_v33, %v50_v32  ;;  %v35_v43 = vld [vmem:[%s1062_s3 + $0x48] sm:$0xff] }
   0x9   :  { %564 = vmatpush3.bf16.msra.mxu1 %v563_v17  ;;  %v24_v36 = vld [vmem:[%s1061_s2] sm:$0xff]  ;;  %623 = vmatpush1.bf16.msra.mxu0 %v622_v34  ;;  %v785_v38 = vrot.slane %v778_v35, %v758_v27  ;;  %v52_v44 = vld [vmem:[%s1062_s3 + $0xd0] sm:$0xff]  ;;  %v625_v46 = vpack.c.bf16 %v93_v40, %v92_v39  ;;  %v53_v47 = vld [vmem:[%s1062_s3 + $0xd8] sm:$0xff]  ;;  %v114_v5 = vcombine.high %v778_v35, %v778_v35 }
   0xa   :  { %566 = vmatprep.subr.bf16.mxu1 %v565_v20  ;;  %v34_v42 = vld [vmem:[%s1062_s3 + $0x40] sm:$0xff]  ;;  %624 = vmatprep.subr.bf16.mxu0 %v678_v8  ;;  %v147_v45 = vcombine.low %v24_v36, %v24_v36  ;;  %v95_v49 = vld [vmem:[%s1062_s3 + $0x228] sm:$0xff]  ;;  %v577_v53 = vpack.c.bf16 %v53_v47, %v52_v44  ;;  %v36_v54 = vld [vmem:[%s1062_s3 + $0x50] sm:$0xff]  ;;  %v876_v18 = vrot.slane %v24_v36, %v758_v27 }
   0xb   :  { %v94_v48 = vld [vmem:[%s1062_s3 + $0x220] sm:$0xff]  ;;  %v129_v50 = vcombine.high %v785_v38, %v785_v38  ;;  %v575_v52 = vpack.c.bf16 %v35_v43, %v34_v42  ;;  %v37_v55 = vld [vmem:[%s1062_s3 + $0x58] sm:$0xff]  ;;  %v55_v59 = vld [vmem:[%s1062_s3 + $0xe8] sm:$0xff]  ;;  %v873_v17 = vrot.slane %v114_v5, %v758_v27 }
   0xc   :  { %v815_v51 = vrot.slane %v147_v45, %v758_v27  ;;  %v54_v56 = vld [vmem:[%s1062_s3 + $0xe0] sm:$0xff]  ;;  %v628_v58 = vpack.c.bf16 %v95_v49, %v94_v48  ;;  %v96_v60 = vld [vmem:[%s1062_s3 + $0x230] sm:$0xff]  ;;  %v97_v61 = vld [vmem:[%s1062_s3 + $0x238] sm:$0xff]  ;;  %v579_v63 = vpack.c.bf16 %v37_v55, %v36_v54  ;;  %v163_v31 = vcombine.high %v876_v18, %v876_v18 }
   0xd   :  { %568 = vmatpush3.bf16.msra.mxu1 %v567_v25  ;;  %626 = vmatpush1.bf16.msra.mxu0 %v625_v46  ;;  %v38_v0 = vld [vmem:[%s1062_s3 + $0x60] sm:$0xff]  ;;  %v581_v1 = vpack.c.bf16 %v55_v59, %v54_v56  ;;  %v39_v2 = vld [vmem:[%s1062_s3 + $0x68] sm:$0xff]  ;;  %v56_v3 = vld [vmem:[%s1062_s3 + $0xf0] sm:$0xff]  ;;  %v631_v6 = vpack.c.bf16 %v97_v61, %v96_v60  ;;  %v130_v30 = vcombine.high %v873_v17, %v873_v17 }
   0xe   :  { %570 = vmatprep.subr.bf16.mxu1 %v569_v28  ;;  %v162_v57 = vcombine.high %v815_v51, %v815_v51  ;;  %627 = vmatprep.subr.bf16.mxu0 %v678_v8  ;;  %v57_v4 = vld [vmem:[%s1062_s3 + $0xf8] sm:$0xff]  ;;  %v98_v7 = vld [vmem:[%s1062_s3 + $0x240] sm:$0xff]  ;;  %v99_v9 = vld [vmem:[%s1062_s3 + $0x248] sm:$0xff]  ;;  %v583_v10 = vpack.c.bf16 %v39_v2, %v38_v0 }
   0xf   :  { %v585_v11 = vpack.c.bf16 %v57_v4, %v56_v3  ;;  %v40_v12 = vld [vmem:[%s1062_s3 + $0x70] sm:$0xff]  ;;  %v41_v13 = vld [vmem:[%s1062_s3 + $0x78] sm:$0xff]  ;;  %v74_v14 = vld [vmem:[%s1062_s3 + $0x180] sm:$0xff]  ;;  %v634_v16 = vpack.c.bf16 %v99_v9, %v98_v7 }
  0x10   :  { %v181_v62 = vsel %vm179_vm0, %v129_v50, %v162_v57  ;;  %v75_v15 = vld [vmem:[%s1062_s3 + $0x188] sm:$0xff]  ;;  %v100_v19 = vld [vmem:[%s1062_s3 + $0x250] sm:$0xff]  ;;  %v101_v20 = vld [vmem:[%s1062_s3 + $0x258] sm:$0xff]  ;;  %v587_v23 = vpack.c.bf16 %v41_v13, %v40_v12 }
  0x11   :  { %572 = vmatpush3.bf16.msra.mxu1 %v571_v37  ;;  %260 = vmatprep.mubr.f32.mxu1 %v181_v62  ;;  %v58_v21 = vld [vmem:[%s1062_s3 + $0x100] sm:$0xff]  ;;  %v59_v22 = vld [vmem:[%s1062_s3 + $0x108] sm:$0xff]  ;;  %v589_v24 = vpack.c.bf16 %v75_v15, %v74_v14  ;;  %v76_v25 = vld [vmem:[%s1062_s3 + $0x190] sm:$0xff]  ;;  %v637_v29 = vpack.c.bf16 %v101_v20, %v100_v19 }
  0x12   :  { %574 = vmatprep.subr.bf16.mxu1 %v573_v41  ;;  %629 = vmatpush1.bf16.msra.mxu0 %v628_v58  ;;  %v77_v26 = vld [vmem:[%s1062_s3 + $0x198] sm:$0xff]  ;;  %v102_v28 = vld [vmem:[%s1062_s3 + $0x260] sm:$0xff]  ;;  %v907_v32 = vld.sshfl [vmem:[%s1060_s1 + $0x8] sm:$0x33 pattern:$0x76325410] }
  0x13   :  { %630 = vmatprep.subr.bf16.mxu0 %v678_v8  ;;  %v103_v33 = vld [vmem:[%s1062_s3 + $0x268] sm:$0xff] }
  0x14   :  { %v665_v34 = vld [vmem:[%s1061_s2 + $0x8] ss:$0 sps:$4 sm:$0xff]  }
  0x15   :  { %576 = vmatpush3.bf16.msra.mxu1 %v575_v52 }
  0x16   :  { %578 = vmatprep.subr.bf16.mxu1 %v577_v53  ;;  %632 = vmatpush1.bf16.msra.mxu0 %v631_v6 }
  0x17   :  { %633 = vmatprep.subr.bf16.mxu0 %v678_v8 }
  0x19   :  { %580 = vmatpush3.bf16.msra.mxu1 %v579_v63 }
  0x1a   :  { %582 = vmatprep.subr.bf16.mxu1 %v581_v1  ;;  %635 = vmatpush1.bf16.msra.mxu0 %v634_v16 }
  0x1b   :  { %636 = vmatprep.subr.bf16.mxu0 %v678_v8 }
  0x1d   :  { %584 = vmatpush3.bf16.msra.mxu1 %v583_v10 }
  0x1e   :  { %586 = vmatprep.subr.bf16.mxu1 %v585_v11 }
  0x1f   :  { %11 = vsyncpa [#allocation4], 0  ;;  %v180_v35 = vsel %vm179_vm0, %v785_v38, %v815_v51  ;;  %v591_v36 = vpack.c.bf16 %v59_v22, %v58_v21  ;;  %v138_v37 = vcombine.high %v907_v32, %v907_v32  ;;  %v922_v39 = vrot.slane %v665_v34, %v758_v27  ;;  %v60_v41 = vld [vmem:[%s1062_s3 + $0x110] sm:$0xff]  ;;  %v61_v42 = vld [vmem:[%s1062_s3 + $0x118] sm:$0xff]  ;;  %638 = vmatpush1.bf16.msra.mxu0 %v637_v29  ;;  %s666_s10 = scalar_lea.hbm %s1064_s5, 16 }
  0x20   :  { %v593_v40 = vpack.c.bf16 %v77_v26, %v76_v25  ;;  %v78_v38 = vld [vmem:[%s1062_s3 + $0x1a0] sm:$0xff]  ;;  %v640_v43 = vpack.c.bf16 %v103_v33, %v102_v28  ;;  %v183_v44 = vsel %vm179_vm0, %v130_v30, %v163_v31  ;;  %v79_v27 = vld [vmem:[%s1062_s3 + $0x1a8] sm:$0xff]  ;;  %639 = vmatprep.subr.bf16.mxu0 %v678_v8  ;;  %v104_v45 = vld [vmem:[%s1062_s3 + $0x270] sm:$0xff]  ;;  %vm192_vm1 = vcmask 326656   ;;  %p667_p0 = scmp.ne.s32.totalorder %s1064_s5, %s666_s10  ;;  %p670_p1 = scmp.lt.u32.totalorder %s666_s10, %s1064_s5 }
  0x21   :  { %588 = vmatpush3.bf16.msra.mxu1 %v587_v23  ;;  %v105_v46 = vld [vmem:[%s1062_s3 + $0x278] sm:$0xff]  ;;  %v172_v47 = vcombine.high %v922_v39, %v922_v39  ;;  %v595_v48 = vpack.c.bf16 %v61_v42, %v60_v41  ;;  %v597_v50 = vpack.c.bf16 %v79_v27, %v78_v38  ;;  %v62_v51 = vld [vmem:[%s1062_s3 + $0x120] sm:$0xff]  ;;  %v63_v52 = vld [vmem:[%s1062_s3 + $0x128] sm:$0xff]  ;;  %v680_v16 = vmov 0.0  }
  0x22   :  { %590 = vmatprep.subr.bf16.mxu1 %v589_v24  ;;  %v80_v53 = vld [vmem:[%s1062_s3 + $0x1b0] sm:$0xff]  ;;  %v643_v54 = vpack.c.bf16 %v105_v46, %v104_v45  ;;  %v81_v55 = vld [vmem:[%s1062_s3 + $0x1b8] sm:$0xff]  ;;  %v106_v56 = vld [vmem:[%s1062_s3 + $0x280] sm:$0xff]  ;;  %v599_v58 = vpack.c.bf16 %v63_v52, %v62_v51  ;;  %v184_v20 = vsel %vm179_vm0, %v907_v32, %v922_v39  ;;  %v182_v33 = vsel %vm179_vm0, %v873_v17, %v876_v18  ;;  %p672_p2 = pnand %p670_p1, %p667_p0 }
  0x23   :  { %v185_v49 = vsel %vm179_vm0, %v138_v37, %v172_v47  ;;  %641 = vmatpush1.bf16.msra.mxu0 %v640_v43  ;;  %v107_v57 = vld [vmem:[%s1062_s3 + $0x288] sm:$0xff]  ;;  %v601_v59 = vpack.c.bf16 %v81_v55, %v80_v53  ;;  %v64_v60 = vld [vmem:[%s1062_s3 + $0x130] sm:$0xff]  ;;  %v65_v61 = vld [vmem:[%s1062_s3 + $0x138] sm:$0xff]  ;;  %vm407_vm2 = vcmask 9216  }
  0x24   :  { %261 = vmatmul.mubr.f32.vlgmr.msra.gmra.mrb[0].mxu1 %v180_v35  ;;  %642 = vmatprep.subr.bf16.mxu0 %v678_v8  ;;  %v82_v62 = vld [vmem:[%s1062_s3 + $0x1c0] sm:$0xff]  ;;  %v646_v63 = vpack.c.bf16 %v107_v57, %v106_v56  ;;  %v83_v0 = vld [vmem:[%s1062_s3 + $0x1c8] sm:$0xff]  ;;  %v108_v1 = vld [vmem:[%s1062_s3 + $0x290] sm:$0xff]  ;;  %v603_v3 = vpack.c.bf16 %v65_v61, %v64_v60 }
  0x25   :  { %592 = vmatpush3.bf16.msra.mxu1 %v591_v36  ;;  %330 = vmatprep.mubr.f32.mxu1 %v183_v44  ;;  %v109_v2 = vld [vmem:[%s1062_s3 + $0x298] sm:$0xff]  ;;  %v605_v4 = vpack.c.bf16 %v83_v0, %v82_v62  ;;  %v66_v5 = vld [vmem:[%s1062_s3 + $0x140] sm:$0xff]  ;;  %v67_v6 = vld [vmem:[%s1062_s3 + $0x148] sm:$0xff] }
  0x26   :  { %594 = vmatprep.subr.bf16.mxu1 %v593_v40  ;;  %486 = vmatprep.mubr.msk.f32.mxu0 %vm192_vm1, %v185_v49  ;;  %v649_v7 = vpack.c.bf16 %v109_v2, %v108_v1  ;;  %v84_v9 = vld [vmem:[%s1062_s3 + $0x1d0] sm:$0xff]  ;;  %v85_v10 = vld [vmem:[%s1062_s3 + $0x1d8] sm:$0xff]  ;;  %v607_v11 = vpack.c.bf16 %v67_v6, %v66_v5  ;;  %v86_v15 = vld [vmem:[%s1062_s3 + $0x1e0] sm:$0xff] }
  0x27   :  { %644 = vmatpush1.bf16.msra.mxu0 %v643_v54  ;;  %v609_v12 = vpack.c.bf16 %v85_v10, %v84_v9  ;;  %v68_v13 = vld [vmem:[%s1062_s3 + $0x150] sm:$0xff]  ;;  %v69_v14 = vld [vmem:[%s1062_s3 + $0x158] sm:$0xff]  ;;  %v110_v19 = vld [vmem:[%s1062_s3 + $0x2a0] sm:$0xff] }
  0x28   :  { %645 = vmatprep.subr.bf16.mxu0 %v678_v8  ;;  %v611_v21 = vpack.c.bf16 %v69_v14, %v68_v13  ;;  %v70_v23 = vld [vmem:[%s1062_s3 + $0x160] sm:$0xff]  ;;  %v71_v24 = vld [vmem:[%s1062_s3 + $0x168] sm:$0xff]  ;;  %v88_v25 = vld [vmem:[%s1062_s3 + $0x1f0] sm:$0xff] }
  0x29   :  { %596 = vmatpush3.bf16.msra.mxu1 %v595_v48  ;;  %v89_v26 = vld [vmem:[%s1062_s3 + $0x1f8] sm:$0xff]  ;;  %v615_v28 = vpack.c.bf16 %v71_v24, %v70_v23  ;;  %v72_v30 = vld [vmem:[%s1062_s3 + $0x170] sm:$0xff]  ;;  %v485_v40 = vld [vmem:[%s1063_s4] ss:$0 sm:$0xff] }
  0x2a   :  { %598 = vmatprep.subr.bf16.mxu1 %v597_v50  ;;  %v617_v29 = vpack.c.bf16 %v89_v26, %v88_v25  ;;  %v73_v31 = vld [vmem:[%s1062_s3 + $0x178] sm:$0xff] }
  0x2b   :  { %647 = vmatpush1.bf16.msra.mxu0 %v646_v63  ;;  %v619_v32 = vpack.c.bf16 %v73_v31, %v72_v30 }
  0x2c   :  { %648 = vmatprep.subr.bf16.mxu0 %v678_v8  ;;  %v87_v8 = vld [vmem:[%s1062_s3 + $0x1e8] sm:$0xff] }
  0x2d   :  { %600 = vmatpush3.bf16.msra.mxu1 %v599_v58  ;;  %v613_v22 = vpack.c.bf16 %v87_v8, %v86_v15 }
  0x2e   :  { %602 = vmatprep.subr.bf16.mxu1 %v601_v59 }
  0x2f   :  { %650 = vmatpush1.bf16.msra.mxu0 %v649_v7 }
  0x30   :  { %376 = vmatprep.subr.mxu0 %v680_v16 }
  0x31   :  { %604 = vmatpush3.bf16.msra.mxu1 %v603_v3 }
  0x32   :  { %606 = vmatprep.subr.bf16.mxu1 %v605_v4 }
  0x33   :  { %377 = vmatpush1.msra.mxu0 %v110_v19 }
  0x34   :  { %401 = vmatmul.mubr.f32.vlgmr.msra.gmra.mrb[0].mxu0 %v184_v20 }
  0x35   :  { %608 = vmatpush3.bf16.msra.mxu1 %v607_v11 }
  0x36   :  { %610 = vmatprep.subr.bf16.mxu1 %v609_v12 }
  0x39   :  { %612 = vmatpush3.bf16.msra.mxu1 %v611_v21 }
  0x3a   :  { %614 = vmatprep.subr.bf16.mxu1 %v613_v22 }
  0x3d   :  { %616 = vmatpush3.bf16.msra.mxu1 %v615_v28 }
  0x3e   :  { %618 = vmatprep.subr.bf16.mxu1 %v617_v29 }
  0x41   :  { %620 = vmatpush3.bf16.msra.mxu1 %v619_v32 }
  0x44   :  { %331 = vmatmul.mubr.f32.vlgmr.msra.gmra.mrb[2].mxu1 %v182_v33 }
  0xf7   :  { %v519_v34 = vpop.f32.mrb[0].mxu1 }
  0xf8   :  { %v520_v35 = vpop.f32.mrb[1].mxu1 }
  0xf9   :  { %v521_v36 = vadd.f32 %v520_v35, %v519_v34 }
  0xfb   :  { %v263_v38 = vadd.f32 %v521_v36, %v485_v40 }
 0x107   :  { %v402_v37 = vpop.f32.mrb[0].mxu0 }
 0x108   :  { %v404_v39 = vpop.f32.mrb[1].mxu0 }
 0x117   :  { %v554_v41 = vpop.f32.mrb[2].mxu1 }
 0x118   :  { %v555_v42 = vpop.f32.mrb[3].mxu1 }
 0x119   :  { %v556_v43 = vadd.f32 %v555_v42, %v554_v41 }
 0x11b   :  { %v333_v44 = vadd.f32 %v556_v43, %v263_v38 }
 0x11d   :  { %v403_v27 = vadd.f32 %v402_v37, %v333_v44 }
 0x11f   :  { %v408_v45 = vsel %vm407_vm2, %v403_v27, 0.0  ;;  %v429_v46 = vrot.slane %v403_v27, 2  ;;  %v406_v17 = vmul.f32 %v403_v27, %v403_v27 }
 0x120   :  { %409 = vadd.xlane.f32.xlu0 %v408_v45 }
 0x121   :  { %v431_v18 = vsel %vm407_vm2, %v429_v46, 0.0  ;;  %v442_v47 = vrot.slane %v406_v17, 2  ;;  %v418_v48 = vsel %vm407_vm2, %v406_v17, 0.0 }
 0x122   :  { %432 = vadd.xlane.f32.xlu1 %v431_v18 }
 0x123   :  { %v444_v49 = vsel %vm407_vm2, %v442_v47, 0.0 }
 0x124   :  { %419 = vadd.xlane.f32.xlu0 %v418_v48 }
 0x126   :  { %445 = vadd.xlane.f32.xlu1 %v444_v49 }
 0x1ad   :  { %v410_v50 = vpop.xlane.xlu0 %409 }
 0x1ae   :  { %v411_v51 = vrot.slane %v410_v50, 4 }
 0x1af   :  { %v433_v52 = vpop.xlane.xlu1 %432 }
 0x1b0   :  { %v412_v53 = vadd.f32 %v411_v51, %v410_v50  ;;  %v434_v54 = vrot.slane %v433_v52, 4 }
 0x1b1   :  { %v420_v55 = vpop.xlane.xlu0 %419 }
 0x1b2   :  { %v413_v56 = vrot.slane %v412_v53, 2  ;;  %v435_v57 = vadd.f32 %v434_v54, %v433_v52  ;;  %v421_v58 = vrot.slane %v420_v55, 4 }
 0x1b3   :  { %v446_v59 = vpop.xlane.xlu1 %445 }
 0x1b4   :  { %v436_v60 = vrot.slane %v435_v57, 2  ;;  %v422_v61 = vadd.f32 %v421_v58, %v420_v55  ;;  %v447_v62 = vrot.slane %v446_v59, 4  ;;  %v414_v63 = vadd.f32 %v413_v56, %v412_v53 }
 0x1b6   :  { %v423_v0 = vrot.slane %v422_v61, 2  ;;  %v448_v1 = vadd.f32 %v447_v62, %v446_v59  ;;  %v415_v2 = vrot.slane %v414_v63, 1  ;;  %v437_v3 = vadd.f32 %v436_v60, %v435_v57 }
 0x1b8   :  { %v424_v4 = vadd.f32 %v423_v0, %v422_v61  ;;  %v449_v5 = vrot.slane %v448_v1, 2  ;;  %v416_v6 = vadd.f32 %v415_v2, %v414_v63  ;;  %v438_v7 = vrot.slane %v437_v3, 1 }
 0x1ba   :  { %v450_v9 = vadd.f32 %v449_v5, %v448_v1  ;;  %651 = vpush %v416_v6  ;;  %v425_v10 = vrot.slane %v424_v4, 1  ;;  %v439_v13 = vadd.f32 %v438_v7, %v437_v3 }
 0x1bc   :  { %v426_v11 = vadd.f32 %v425_v10, %v424_v4  ;;  %v451_v12 = vrot.slane %v450_v9, 1 }
 0x1be   :  { %653 = vpush %v426_v11  ;;  %v452_v14 = vadd.f32 %v451_v12, %v450_v9 }
 0x1bf   :  { %655 = vpush %v439_v13 }
 0x1c0   :  { %657 = vpush %v452_v14 }
 0x1eb   :  { %s652_s3 = spop %651 }
 0x1ec   :  { %s455_s4 = smul.f32 2.0, %s652_s3 }
 0x1ef   :  { %s654_s17 = spop %653 }
 0x1f0   :  { %s456_s18 = ssub.f32 %s654_s17, %s455_s4  ;;  %s656_s19 = spop %655 }
 0x1f1   :  { %s460_s21 = smul.f32 2.0, %s656_s19  ;;  %s658_s22 = spop %657 }
 0x1f2   :  { %s457_s20 = sadd.f32 4.0, %s456_s18  ;;  %s464_s29 = smul.f32 0.5, %s654_s17 }
 0x1f3   :  { %s461_s24 = ssub.f32 %s658_s22, %s460_s21 }
 0x1f4   :  { %s458_s23 = smul.f32 0.5, %s457_s20 }
 0x1f5   :  { %s462_s28 = sadd.f32 4.0, %s461_s24 }
 0x1f6   :  { %s459_s27 = smul.f32 %s458_s23, %s1059_s0 }
 0x1f7   :  { %s463_s1 = smul.f32 0.5, %s462_s28 }
 0x1f8   :  { %468 = sst [smem:[#allocation3]] %s459_s27 }
 0x1f9   :  { %s465_s30 = sadd.f32 %s464_s29, %s463_s1 }
 0x1fb   :  { %s466_s7 = smul.f32 %s465_s30, %s1059_s0 }
 0x1fd   :  { %470 = sst [smem:[#allocation3 + $0x1]] %s466_s7 }
 0x1fe   :  { %675 = shalt.err (!%p672_p2)
}
 0x1ff   :  { %s681_s15 = smov [#allocation3]  }
 0x200   :  { %478 = dma.smem_to_hbm %s681_s15, 16, %s1064_s5, [#allocation4]  }
 0x201   :  { %676 = dma.done.wait [#allocation4], 16  }
 0x202   :  { %677 = vsyncadd [#allocation4], 4294967280 }
 0x203   :  { %482 = sfence }
 0x204   :  { %483 = vsyncpa [#allocation4], 1 }

</bundles_post_ra>
